<compile_context>
chip_gen: v6e
topology: v6e:2x2x1
jax: 0.10.0
libtpu: 0.0.40
codegen_flags: <defaults>
</compile_context>

<pallas_src>
import jax
import jax.numpy as jnp
from jax.experimental import pallas as pl
from jax.experimental.pallas import tpu as pltpu

_LANE = 128                        # TPU lane width (unmasked stores at multiples of 128)
_SUBLANE = 8                       # f32 sublane count
_TARGET_BLOCK_ELEMS = 512 * 1024   # ~2 MiB f32 per block; ~8 MiB VMEM w/ double buffering


def _copy_kernel(x_ref, o_ref):
    # Pass-through on the lane-dense (block_rows, 128) tile resident in VMEM.
    o_ref[...] = x_ref[...]


@jax.jit
def _identity_copy(x):
    """Lane-dense streaming HBM->VMEM->HBM copy (contractual kernel-boundary path)."""
    orig_shape = x.shape
    n = x.size

    # Flatten to (rows, 128); pick a block of whole sublanes sized for the HBM roofline.
    rows = -(-n // _LANE)
    block_rows = min(rows, _TARGET_BLOCK_ELEMS // _LANE)
    if rows >= _SUBLANE:
        block_rows = max(_SUBLANE, (block_rows // _SUBLANE) * _SUBLANE)
    rows_pad = -(-rows // block_rows) * block_rows
    n_pad = rows_pad * _LANE

    xf = x.reshape(-1)
    if n_pad != n:
        xf = jnp.pad(xf, (0, n_pad - n))
    x2d = xf.reshape(rows_pad, _LANE)

    y2d = pl.pallas_call(
        _copy_kernel,
        out_shape=jax.ShapeDtypeStruct((rows_pad, _LANE), x.dtype),
        grid_spec=pltpu.PrefetchScalarGridSpec(
            num_scalar_prefetch=0,
            grid=(rows_pad // block_rows,),
            in_specs=[pl.BlockSpec((block_rows, _LANE), lambda i: (i, 0))],
            out_specs=pl.BlockSpec((block_rows, _LANE), lambda i: (i, 0)),
        ),
        compiler_params=pltpu.CompilerParams(
            dimension_semantics=("parallel",),   # shards across v7x's 2 TCs; no-op v5e/v6e
            vmem_limit_bytes=32 * 1024 * 1024,
        ),
        # Alias the (flattened) input buffer to the output so XLA can donate it
        # and the identity becomes (near) zero-cost when the buffer is free.
        input_output_aliases={0: 0},
    )(x2d)

    return y2d.reshape(-1)[:n].reshape(orig_shape)


def tpalstm_branch_forward(x, *, mark=True, res=True, se=True,
                           dropout_rate=0.2, training=False,
                           force_kernel=False):
    """Pallas implementation of TPALSTM_branch.forward.

    x: (batch, channels, seq_len) array. Inference forward is the identity.
    """
    del res, se, dropout_rate  # constructor-only attributes, unused in forward

    if training and mark:
        # TODO(synk): training-only stochastic Models.mark_input / Models.scaler_input
        # augmentations rely on an external `Models` module and torch RNG; not implemented.
        raise NotImplementedError(
            "TPALSTM_branch training-mode mark/scale augmentation is not implemented.")

    if not force_kernel:
        # Best optimization for an identity forward: move 0 bytes.
        return jnp.asarray(x)

    return _identity_copy(x)


if __name__ == "__main__":
    key = jax.random.PRNGKey(0)
    batch, channels, seq_len = 2, 4, 128
    x = jax.random.normal(key, (batch, channels, seq_len), dtype=jnp.float32)

    y_fast = tpalstm_branch_forward(x)                      # zero-copy eval path
    y_kern = tpalstm_branch_forward(x, force_kernel=True)   # Pallas copy-kernel path
    jax.block_until_ready((y_fast, y_kern))

    assert y_fast.shape == x.shape and y_fast.dtype == x.dtype
    assert y_kern.shape == x.shape and y_kern.dtype == x.dtype
    assert jnp.array_equal(y_fast, x)
    assert jnp.array_equal(y_kern, x)

    # training=True must not silently return un-augmented data.
    try:
        tpalstm_branch_forward(x, training=True)
        raise AssertionError("expected NotImplementedError for training=True")
    except NotImplementedError:
        pass

    print("KERNEL_OK")
</pallas_src>

<mosaic_0001>
module attributes {stable_mosaic.version = 11 : i64} {
  func.func @_copy_kernel(%arg0: i32, %arg1: memref<8x128xf32, #tpu.memory_space<vmem>>, %arg2: memref<8x128xf32, #tpu.memory_space<vmem>>) attributes {dimension_semantics = [#tpu.dimension_semantics<parallel>], iteration_bounds = array<i64: 1>, scalar_prefetch = 0 : i64, scratch_operands = 0 : i64, tpu.core_type = #tpu.core_type<tc>, window_params = [{transform_indices = @transform_0, window_bounds = array<i64: 8, 128>}, {transform_indices = @transform_1, window_bounds = array<i64: 8, 128>}]} {
    %c0 = arith.constant 0 : index
    %c0_0 = arith.constant 0 : index
    %0 = vector.load %arg1[%c0, %c0_0] : memref<8x128xf32, #tpu.memory_space<vmem>>, vector<8x128xf32>
    %c0_1 = arith.constant 0 : index
    %c0_2 = arith.constant 0 : index
    %1 = vector.load %arg2[%c0_1, %c0_2] : memref<8x128xf32, #tpu.memory_space<vmem>>, vector<8x128xf32>
    tpu.vector_store %arg2[%c0_1, %c0_2], %0 {strides = array<i32>} : memref<8x128xf32, #tpu.memory_space<vmem>>, vector<8x128xf32>,
    return
  }
  func.func @transform_0(%arg0: i32) -> (i32, i32) {
    %c0_i32 = arith.constant 0 : i32
    %c0_i32_0 = arith.constant 0 : i32
    return %arg0, %c0_i32 : i32, i32
  }
  func.func @transform_1(%arg0: i32) -> (i32, i32) {
    %c0_i32 = arith.constant 0 : i32
    %c0_i32_0 = arith.constant 0 : i32
    return %arg0, %c0_i32 : i32, i32
  }
}

</mosaic_0001>

<bundles_post_ra>
// kernel: _identity_copy.1
= control target key start
LH: loop header
LB: loop body
LE: loop exit
PB: predicated region body
PF: predicated region fallthrough
CT: control target
= control target key end

     0   :  { %s30_s0 = inlined_call_operand.vmem [shape: f32[8,128], index: 0, kind: input, shape index: {}, may-alias: {0,1}]   ;;  %s31_s1 = inlined_call_operand.vmem [shape: f32[8,128], index: 1, kind: output, shape index: {}, may-alias: {0,1}]  }
   0x1   :  { %v8_v0 = vld [vmem:[%s30_s0] sm:$0xff] }
   0x2   :  { %9 = vst [vmem:[%s31_s1] sm:$0xff] %v8_v0 }

</bundles_post_ra>
